<compile_context>
chip_gen: v7x
topology: tpu7x:2x2x1
jax: 0.10.0
libtpu: 0.0.40
codegen_flags: <defaults>
</compile_context>

<pallas_src>
import jax
import jax.numpy as jnp
from jax.experimental import pallas as pl
from jax.experimental.pallas import tpu as pltpu


def _lora_kernel(alpha_ref, x_ref, a_ref, b_ref, o_ref, xa_ref):
    # Recompute the rank-space projection only when the out_dim tile index
    # resets: x and A are resident across the j axis, so x @ A happens once per
    # row tile no matter how many out_dim tiles the grid has.
    @pl.when(pl.program_id(1) == 0)
    def _():
        xa = jnp.dot(x_ref[...], a_ref[...], preferred_element_type=jnp.float32)
        # Scale the small (tm, rank) intermediate, not the (tm, out_dim) output.
        xa_ref[...] = alpha_ref[0, 0] * xa

    # Cast back to the weight dtype so the second matmul runs at narrow-operand
    # MXU throughput for bf16 weights (no-op for f32).
    xa = xa_ref[...].astype(b_ref.dtype)
    out = jnp.dot(xa, b_ref[...], preferred_element_type=jnp.float32)
    o_ref[...] = out.astype(o_ref.dtype)


def _vmem_capacity_bytes():
    try:
        return int(pltpu.get_tpu_info().vmem_capacity_bytes)
    except Exception:
        return 64 << 20  # conservative fallback (v7x per-TensorCore VMEM)


def _select_tiling(batch, in_dim, rank, out_dim, x_item, w_item, o_item,
                   budget_bytes, block_m_cap):
    LANE = 128
    # bf16 packs (16, 128) per vreg; keep sublane tiles a multiple of 16 to
    # avoid masked partial stores.  8 is enough for f32.
    sub = 16 if (x_item == 2 or o_item == 2) else 8

    def fits(tm, tn):
        need = (
            2 * in_dim * rank * w_item   # A (pipeline double-buffers even resident blocks)
            + 2 * rank * tn * w_item     # B tile (double-buffered)
            + 2 * tm * in_dim * x_item   # x row tile (double-buffered)
            + 2 * tm * tn * o_item       # out tile (double-buffered)
            + tm * tn * 4                # f32 result of the second matmul
            + tm * rank * 4              # xa scratch (f32)
        )
        return need <= budget_bytes

    def max_tm(tn):
        tm = min(batch, block_m_cap)
        while tm > sub and not fits(tm, tn):
            tm = max(sub, tm // 2)
        if tm < batch:
            tm = max(sub, (tm // sub) * sub)
        return tm

    # out_dim tile candidates: full dim first, then lane-dense divisors.
    # (If out_dim is not a multiple of 128 the block must span the full dim;
    #  tiny out_dims like the demo's 16 inherently store masked -- not worth
    #  optimizing, real LoRA out_dims are multiples of 128.)
    tn_cands = [out_dim]
    if out_dim % LANE == 0:
        for cand in (4096, 2048, 1024, 512, 256, 128):
            if cand < out_dim and out_dim % cand == 0:
                tn_cands.append(cand)

    target_tm = min(batch, 512)  # keeps per-grid-step overhead at the few-% level
    tm, tn = 0, tn_cands[0]
    for cand_tn in tn_cands:          # descending tn: widest tile that still
        cand_tm = max_tm(cand_tn)     # lets the row tile reach the target wins
        if cand_tm >= target_tm:
            tm, tn = cand_tm, cand_tn
            break
        if cand_tm > tm:
            tm, tn = cand_tm, cand_tn

    # v7x megacore: prefer an even number of row tiles so both TensorCores get
    # balanced work along the "parallel" batch axis (harmless on v5e/v6e).
    grid_m = pl.cdiv(batch, tm)
    if grid_m > 1 and grid_m % 2 == 1:
        tm_even = -(-batch // (grid_m + 1))               # ceil divide
        tm_even = max(sub, ((tm_even + sub - 1) // sub) * sub)
        if tm_even < tm and fits(tm_even, tn):
            tm = tm_even

    return tm, tn


def lora_forward(x, A, B, alpha, *, block_m=1024, vmem_budget_bytes=None):
    """alpha * (x @ A @ B).  x: (batch, in_dim), A: (in_dim, rank), B: (rank, out_dim)."""
    batch, in_dim = x.shape
    in_dim_a, rank = A.shape
    rank_b, out_dim = B.shape
    assert in_dim_a == in_dim and rank_b == rank

    x_item = jnp.dtype(x.dtype).itemsize
    w_item = jnp.dtype(A.dtype).itemsize
    o_item = x_item  # output matches x dtype

    capacity = _vmem_capacity_bytes()
    if vmem_budget_bytes is None:
        # ~75% of physical VMEM: ~96 MiB on v5e/v6e (128 MiB), ~48 MiB on v7x (64 MiB).
        vmem_budget_bytes = (capacity * 3) // 4
    # Actually tell Mosaic about the budget (+ headroom for internal scratch).
    vmem_limit_bytes = int(min(capacity - (4 << 20), vmem_budget_bytes + (8 << 20)))

    tm, tn = _select_tiling(batch, in_dim, rank, out_dim,
                            x_item, w_item, o_item,
                            vmem_budget_bytes, block_m)

    grid = (pl.cdiv(batch, tm), pl.cdiv(out_dim, tn))

    alpha_arr = jnp.full((1, 1), alpha, dtype=jnp.float32)

    cost = pl.CostEstimate(
        flops=2 * batch * rank * (in_dim + out_dim),
        bytes_accessed=(x.size * x_item + A.size * w_item + B.size * w_item
                        + batch * out_dim * o_item),
        transcendentals=0,
    )

    return pl.pallas_call(
        _lora_kernel,
        out_shape=jax.ShapeDtypeStruct((batch, out_dim), x.dtype),
        grid=grid,
        in_specs=[
            # alpha: whole (1,1) scalar kept in SMEM (no recompile per alpha).
            pl.BlockSpec(memory_space=pltpu.MemorySpace.SMEM),
            # x: one row tile per i, resident across the out_dim (j) axis.
            pl.BlockSpec((tm, in_dim), lambda i, j: (i, 0)),
            # A: full array, constant index_map -> resident across the grid.
            pl.BlockSpec((in_dim, rank), lambda i, j: (0, 0)),
            # B: lane-dense out_dim tile.
            pl.BlockSpec((rank, tn), lambda i, j: (0, j)),
        ],
        out_specs=pl.BlockSpec((tm, tn), lambda i, j: (i, j)),
        scratch_shapes=[pltpu.VMEM((tm, rank), jnp.float32)],
        compiler_params=pltpu.CompilerParams(
            # Row tiles are independent -> shard across TensorCores on v7x.
            # The out_dim axis must stay sequential ("arbitrary") so the xa
            # scratch written at j == 0 is valid for the following j's.
            dimension_semantics=("parallel", "arbitrary"),
            vmem_limit_bytes=vmem_limit_bytes,
        ),
        cost_estimate=cost,
    )(alpha_arr, x, A, B)


if __name__ == "__main__":
    # Module __init__ shapes: A (in_dim, rank), B (rank, out_dim), scalar alpha.
    batch, in_dim, rank, out_dim = 8, 32, 4, 16
    alpha = 2.0

    key = jax.random.PRNGKey(0)
    kx, ka, kb = jax.random.split(key, 3)

    x = jax.random.normal(kx, (batch, in_dim), dtype=jnp.float32)
    # A ~ randn(in_dim, rank) / sqrt(rank), matching the PyTorch init.
    A = jax.random.normal(ka, (in_dim, rank), dtype=jnp.float32) / jnp.sqrt(
        jnp.float32(rank)
    )
    # PyTorch inits B to zeros (output would be trivially zero); use small
    # deterministic random values so the kernel path is actually exercised.
    B = 0.01 * jax.random.normal(kb, (rank, out_dim), dtype=jnp.float32)

    # f32 path (matches an all-f32 reference at tight tolerance).
    out = jax.block_until_ready(lora_forward(x, A, B, alpha))
    ref = alpha * (x @ A @ B)
    assert out.shape == (batch, out_dim)
    assert jnp.allclose(out, ref, atol=1e-5, rtol=1e-5)

    # bf16 serving path (halves HBM traffic; rank-space intermediate is rounded
    # to bf16 before the second matmul, so compare at bf16 tolerance).
    xb, Ab, Bb = (t.astype(jnp.bfloat16) for t in (x, A, B))
    out_bf16 = jax.block_until_ready(lora_forward(xb, Ab, Bb, alpha))
    ref_bf16 = alpha * (xb.astype(jnp.float32) @ Ab.astype(jnp.float32)
                        @ Bb.astype(jnp.float32))
    assert out_bf16.shape == (batch, out_dim)
    assert jnp.allclose(out_bf16.astype(jnp.float32), ref_bf16, atol=3e-2, rtol=3e-2)

    # TODO(synk): if xprof shows exposed DMA gaps after these fixes, sweep
    # pipeline_mode=pl.Buffered(3) on the x input spec (costs one extra x tile).
    print("KERNEL_OK")
</pallas_src>

<mosaic_0001>
module attributes {stable_mosaic.version = 11 : i64} {
  func.func @_lora_kernel(%arg0: i32, %arg1: i32, %arg2: memref<1x1xf32, #tpu.memory_space<smem>>, %arg3: memref<8x32xf32, #tpu.memory_space<vmem>>, %arg4: memref<32x4xf32, #tpu.memory_space<vmem>>, %arg5: memref<4x16xf32, #tpu.memory_space<vmem>>, %arg6: memref<8x16xf32, #tpu.memory_space<vmem>>, %arg7: memref<8x4xf32, #tpu.memory_space<vmem>>) attributes {dimension_semantics = [#tpu.dimension_semantics<parallel>, #tpu.dimension_semantics<arbitrary>], iteration_bounds = array<i64: 1, 1>, scalar_prefetch = 0 : i64, scratch_operands = 1 : i64, tpu.core_type = #tpu.core_type<tc>, window_params = [{transform_indices = @transform_0, window_bounds = array<i64: 1, 1>}, {transform_indices = @transform_1, window_bounds = array<i64: 8, 32>}, {pipeline_mode = #tpu.pipeline_mode<synchronous>, transform_indices = @transform_2, window_bounds = array<i64: 32, 4>}, {transform_indices = @transform_3, window_bounds = array<i64: 4, 16>}, {transform_indices = @transform_4, window_bounds = array<i64: 8, 16>}]} {
    %c0_i32 = arith.constant 0 : i32
    %0 = arith.cmpi eq, %arg1, %c0_i32 : i32
    %1 = arith.extui %0 : i1 to i32
    %c0_i32_0 = arith.constant 0 : i32
    %2 = arith.cmpi ne, %1, %c0_i32_0 : i32
    scf.if %2 {
      %c0_6 = arith.constant 0 : index
      %c0_7 = arith.constant 0 : index
      %7 = vector.load %arg3[%c0_6, %c0_7] : memref<8x32xf32, #tpu.memory_space<vmem>>, vector<8x32xf32>
      %c0_8 = arith.constant 0 : index
      %c0_9 = arith.constant 0 : index
      %8 = vector.load %arg4[%c0_8, %c0_9] : memref<32x4xf32, #tpu.memory_space<vmem>>, vector<32x4xf32>
      %cst_10 = arith.constant dense<0.000000e+00> : vector<8x4xf32>
      %9 = tpu.matmul %7, %8, %cst_10 {dimension_numbers = #tpu.dot_dimension_numbers<[1], [0], [0], [1], [0, 0, 1, 1], [], []>} : vector<8x32xf32>, vector<32x4xf32>, vector<8x4xf32> -> vector<8x4xf32>
      %c0_11 = arith.constant 0 : index
      %c0_12 = arith.constant 0 : index
      %10 = memref.load %arg2[%c0_11, %c0_12] : memref<1x1xf32, #tpu.memory_space<smem>>
      %11 = vector.broadcast %10 : f32 to vector<8x4xf32>
      %12 = arith.mulf %11, %9 : vector<8x4xf32>
      %c0_13 = arith.constant 0 : index
      %c0_14 = arith.constant 0 : index
      %13 = vector.load %arg7[%c0_13, %c0_14] : memref<8x4xf32, #tpu.memory_space<vmem>>, vector<8x4xf32>
      tpu.vector_store %arg7[%c0_13, %c0_14], %12 {strides = array<i32>} : memref<8x4xf32, #tpu.memory_space<vmem>>, vector<8x4xf32>,
    } else {
    }
    %c0 = arith.constant 0 : index
    %c0_1 = arith.constant 0 : index
    %3 = vector.load %arg7[%c0, %c0_1] : memref<8x4xf32, #tpu.memory_space<vmem>>, vector<8x4xf32>
    %c0_2 = arith.constant 0 : index
    %c0_3 = arith.constant 0 : index
    %4 = vector.load %arg5[%c0_2, %c0_3] : memref<4x16xf32, #tpu.memory_space<vmem>>, vector<4x16xf32>
    %cst = arith.constant dense<0.000000e+00> : vector<8x16xf32>
    %5 = tpu.matmul %3, %4, %cst {dimension_numbers = #tpu.dot_dimension_numbers<[1], [0], [0], [1], [0, 0, 1, 1], [], []>} : vector<8x4xf32>, vector<4x16xf32>, vector<8x16xf32> -> vector<8x16xf32>
    %c0_4 = arith.constant 0 : index
    %c0_5 = arith.constant 0 : index
    %6 = vector.load %arg6[%c0_4, %c0_5] : memref<8x16xf32, #tpu.memory_space<vmem>>, vector<8x16xf32>
    tpu.vector_store %arg6[%c0_4, %c0_5], %5 {strides = array<i32>} : memref<8x16xf32, #tpu.memory_space<vmem>>, vector<8x16xf32>,
    return
  }
  func.func @transform_0(%arg0: i32, %arg1: i32) -> (i32, i32) {
    %c0_i32 = arith.constant 0 : i32
    %c0_i32_0 = arith.constant 0 : i32
    %c0_i32_1 = arith.constant 0 : i32
    return %c0_i32, %c0_i32_0 : i32, i32
  }
  func.func @transform_1(%arg0: i32, %arg1: i32) -> (i32, i32) {
    %c0_i32 = arith.constant 0 : i32
    %c0_i32_0 = arith.constant 0 : i32
    return %arg0, %c0_i32 : i32, i32
  }
  func.func @transform_2(%arg0: i32, %arg1: i32) -> (i32, i32) {
    %c0_i32 = arith.constant 0 : i32
    %c0_i32_0 = arith.constant 0 : i32
    %c0_i32_1 = arith.constant 0 : i32
    return %c0_i32, %c0_i32_0 : i32, i32
  }
  func.func @transform_3(%arg0: i32, %arg1: i32) -> (i32, i32) {
    %c0_i32 = arith.constant 0 : i32
    %c0_i32_0 = arith.constant 0 : i32
    return %c0_i32, %arg1 : i32, i32
  }
  func.func @transform_4(%arg0: i32, %arg1: i32) -> (i32, i32) {
    %c0_i32 = arith.constant 0 : i32
    return %arg0, %arg1 : i32, i32
  }
}

</mosaic_0001>

<bundles_post_ra>
// kernel: tpu_custom_call.1
= control target key start
LH: loop header
LB: loop body
LE: loop exit
PB: predicated region body
PF: predicated region fallthrough
CT: control target
= control target key end

     0   :  { %v263_v3 = vmov 0.0|0.0   ;;  %vm264_vm0 = vmmov 0   ;;  %v265_v6 = vmov 0.0   ;;  %s325_s0 = inlined_call_operand.<no memory space> [shape: f32[1,1], index: 0, kind: input, shape index: {}]   ;;  %s326_s1 = inlined_call_operand.vmem [shape: f32[8,32], index: 1, kind: input, shape index: {}]   ;;  %s327_s2 = inlined_call_operand.vmem [shape: f32[32,4], index: 2, kind: input, shape index: {}]   ;;  %s328_s3 = inlined_call_operand.vmem [shape: f32[4,16], index: 3, kind: input, shape index: {}]   ;;  %s329_s4 = inlined_call_operand.hbm [shape: f32[8,16], index: 4, kind: output, shape index: {}]  }
   0x1   :  { %v24_v0 = vld [vmem:[%s327_s2] sm:$0xff]  ;;  %v25_v1 = vld [vmem:[%s327_s2 + $0x8] sm:$0xff]  ;;  %v26_v2 = vld [vmem:[%s327_s2 + $0x10] sm:$0xff]  ;;  %229 = vmatprep.subr.bf16.mxu0 %v263_v3  ;;  %221 = vmatprep.mubr.msk.f32.mxu0 %vm264_vm0, %v265_v6 }
   0x2   :  { %v230_v4 = vpack.c.bf16 %v25_v1, %v24_v0  ;;  %v27_v5 = vld [vmem:[%s327_s2 + $0x18] sm:$0xff] }
   0x3   :  { %10 = vsyncpa [#allocation5], 0  ;;  %224 = vmatprep.subr.mxu1 %v265_v6  ;;  %226 = vmatprep.mubr.msk.f32.mxu1 %vm264_vm0, %v265_v6  ;;  %v233_v7 = vpack.c.bf16 %v27_v5, %v26_v2  ;;  %v23_v8 = vld [vmem:[%s326_s1] sm:$0xff]  ;;  %vm28_vm1 = vcmask 261120   ;;  %vm113_vm2 = vcmask 1043456   ;;  %v103_v10 = vstv %s325_s0  ;;  %s266_s1 = smov [#allocation4]  }
   0x4   :  { %231 = vmatpush3.bf16.msra.mxu0 %v230_v4  ;;  %v108_v9 = vld [vmem:[%s328_s3] sm:$0xf]  ;;  %vm105_vm3 = vcmask 31744   ;;  %s195_s28 = sshll.u32 %s266_s1, 4  ;;  %vm187_vm4 = vcmask 130048   ;;  %s196_s28 = int_to_ptr.vmem [resolvable:$true] %s195_s28 }
   0x5   :  { %232 = vmatprep.subr.bf16.mxu0 %v263_v3  ;;  %225 = vmatpush3.msk.msra.mxu1 %vm113_vm2, %v108_v9  ;;  %s239_s3 = scalar_lea.vmem %s196_s28, 128  ;;  %p244_p1 = scmp.lt.s32.totalorder %s196_s28, %s196_s28 }
   0x6   :  { %p240_p0 = scmp.ne.s32.totalorder %s196_s28, %s239_s3  ;;  %p245_p2 = scmp.lt.s32.totalorder %s239_s3, %s239_s3 }
   0x8   :  { %234 = vmatpush3.bf16.msra.mxu0 %v233_v7  ;;  %p246_p3 = por %p245_p2, %p244_p1 }
   0xa   :  { %p247_p4 = pnand %p246_p3, %p240_p0 }
   0xb   :  { %222 = vmatmul.mubr.msk.f32.vlgmr.msra.gmra.mrb[0].mxu0 %vm28_vm1, %v23_v8 }
  0xde   :  { %v98_v11 = vpop.f32.mrb[0].mxu0 }
  0xdf   :  { %v104_v12 = vmul.f32 %v103_v10, %v98_v11  ;;  %v223_v13 = vpop.f32.mrb[1].mxu0 }
  0xe1   :  { %106 = vst.msk [vmem:[#allocation2] sm:$0xff] %vm105_vm3, %v104_v12 }
  0xe8   :  { %v107_v14 = vld [vmem:[#allocation2] sm:$0xff] }
  0xe9   :  { %227 = vmatmul.mubr.msk.f32.vlgmr.msra.gmra.mrb[0].mxu1 %vm105_vm3, %v107_v14 }
 0x1bc   :  { %v183_v15 = vpop.f32.mrb[0].mxu1 }
 0x1bd   :  { %188 = vst.msk [vmem:[#allocation4] sm:$0xff] %vm187_vm4, %v183_v15  ;;  %v228_v16 = vpop.f32.mrb[1].mxu1 }
 0x1be   :  { %250 = shalt.err (!%p247_p4)
}
 0x1bf   :  { %s251_s30 = scalar_lea.hbm %s329_s4, 128 }
 0x1c0   :  { %p252_p5 = scmp.ne.s32.totalorder %s329_s4, %s251_s30  ;;  %p255_p6 = scmp.lt.u32.totalorder %s251_s30, %s329_s4 }
 0x1c2   :  { %p257_p7 = pnand %p255_p6, %p252_p5 }
 0x1c4   :  { %260 = shalt.err (!%p257_p7)
}
 0x1c5   :  { %198 = dma.vmem_to_hbm [thread:$0]  %s196_s28, 128, %s329_s4, [#allocation5]  }
 0x1c6   :  { %261 = dma.done.wait [#allocation5], 128  }
 0x1c7   :  { %262 = vsyncadd [#allocation5], 4294967168 }
 0x1c8   :  { %202 = vsyncpa [#allocation5], 1 }

</bundles_post_ra>
